<compile_context>
chip_gen: v7x
topology: tpu7x:2x2x1
jax: 0.10.0
libtpu: 0.0.40
codegen_flags: <defaults>
</compile_context>

<pallas_src>
import math

import jax
import jax.numpy as jnp
from jax import lax
from jax.experimental import pallas as pl
from jax.experimental.pallas import tpu as pltpu


def _make_switch_loss_kernel(same_id: bool):
    """Kernel specialized on the same_ID target (trace-time constant)."""

    def kernel(x1_ref, x2_ref, w_ref, out_ref, e1_acc, e2_acc):
        # x1_ref, x2_ref : VMEM (B, tk)      -- image tiles along F
        # w_ref          : VMEM (tk, D)      -- embedding-weight tile along F
        # out_ref        : SMEM (1, 1) f32   -- scalar loss
        # e1_acc, e2_acc : VMEM (B, D) f32   -- embedding accumulators
        k = pl.program_id(0)

        @pl.when(k == 0)
        def _init():
            e1_acc[...] = jnp.zeros_like(e1_acc)
            e2_acc[...] = jnp.zeros_like(e2_acc)

        w = w_ref[...]
        e1_acc[...] += jnp.dot(x1_ref[...], w, preferred_element_type=jnp.float32)
        e2_acc[...] += jnp.dot(x2_ref[...], w, preferred_element_type=jnp.float32)

        @pl.when(k == pl.num_programs(0) - 1)
        def _epilogue():
            e1 = e1_acc[...]                                    # (B, D) f32
            e2 = e2_acc[...]                                    # (B, D) f32

            # cosine similarity along the embedding dim (torch eps = 1e-8)
            dot = jnp.sum(e1 * e2, axis=-1, keepdims=True)      # (B, 1)
            n1sq = jnp.sum(e1 * e1, axis=-1, keepdims=True)     # (B, 1)
            n2sq = jnp.sum(e2 * e2, axis=-1, keepdims=True)     # (B, 1)
            sim = dot * lax.rsqrt(jnp.maximum(n1sq * n2sq, 1e-16))

            # probabilities; clip so fp error (|sim| slightly > 1) can't NaN.
            p = jnp.clip((sim + 1.0) * 0.5, 0.0, 1.0)

            # BCE vs constant target (specialized on same_id), mean reduction.
            # torch.binary_cross_entropy clamps each log term at -100.
            if same_id:
                log_term = jnp.maximum(jnp.log(p), -100.0)
            else:
                log_term = jnp.maximum(jnp.log(1.0 - p), -100.0)
            out_ref[0, 0] = -jnp.mean(log_term)

    return kernel


def _pick_tk(F: int, D: int, B: int, itemsize: int, vmem_budget: int = 8 << 20) -> int:
    """Largest lane-aligned contraction tile whose double-buffered working set
    (W tile + both image tiles) fits the budget and divides F evenly."""
    for tk in (4096, 2048, 1024, 512, 256, 128):
        if F % tk == 0 and 2 * tk * (D + 2 * B) * itemsize <= vmem_budget:
            return tk
    return F  # small / odd F: single untiled block


def switch_loss(first_image, second_image, w_embed, same_id: bool, *, tk=None):
    """first_image / second_image: (B, C, H, W). Returns scalar f32 loss.

    Inputs may be bf16 (recommended: halves the dominant HBM stream) or f32.
    """
    B = first_image.shape[0]
    F = int(math.prod(first_image.shape[1:]))
    D = w_embed.shape[1]

    # Free reshapes; no HBM concatenate.
    x1 = first_image.reshape(B, F)
    x2 = second_image.reshape(B, F)

    itemsize = jnp.dtype(w_embed.dtype).itemsize
    if tk is None:
        tk = _pick_tk(F, D, B, itemsize)
    assert F % tk == 0, (F, tk)
    n_k = F // tk

    kernel = _make_switch_loss_kernel(bool(same_id))

    cost = pl.CostEstimate(
        flops=2 * (2 * B) * F * D,
        transcendentals=2 * B,  # rsqrt + log per pair (approx)
        bytes_accessed=(F * D + 2 * B * F) * itemsize + 4,
    )

    loss = pl.pallas_call(
        kernel,
        out_shape=jax.ShapeDtypeStruct((1, 1), jnp.float32),
        grid_spec=pltpu.PrefetchScalarGridSpec(
            num_scalar_prefetch=0,
            grid=(n_k,),
            in_specs=[
                pl.BlockSpec((B, tk), lambda k: (0, k)),   # first image tile
                pl.BlockSpec((B, tk), lambda k: (0, k)),   # second image tile
                pl.BlockSpec((tk, D), lambda k: (k, 0)),   # weight tile
            ],
            out_specs=pl.BlockSpec(memory_space=pltpu.MemorySpace.SMEM),
            scratch_shapes=[
                pltpu.VMEM((B, D), jnp.float32),
                pltpu.VMEM((B, D), jnp.float32),
            ],
        ),
        compiler_params=pltpu.CompilerParams(
            dimension_semantics=("arbitrary",),      # F is a reduction axis
            vmem_limit_bytes=32 * 1024 * 1024,
        ),
        cost_estimate=cost,
    )(x1, x2, w_embed)
    return loss[0, 0]


def _reference(first_image, second_image, w_embed, same_id: bool):
    B = first_image.shape[0]
    x1 = first_image.reshape(B, -1).astype(jnp.float32)
    x2 = second_image.reshape(B, -1).astype(jnp.float32)
    w = w_embed.astype(jnp.float32)
    e1 = x1 @ w
    e2 = x2 @ w
    sim = jnp.sum(e1 * e2, -1) * lax.rsqrt(
        jnp.maximum(jnp.sum(e1 * e1, -1) * jnp.sum(e2 * e2, -1), 1e-16)
    )
    p = jnp.clip((sim + 1.0) / 2.0, 0.0, 1.0)
    if same_id:
        log_term = jnp.maximum(jnp.log(p), -100.0)
    else:
        log_term = jnp.maximum(jnp.log(1.0 - p), -100.0)
    return -jnp.mean(log_term)


if __name__ == "__main__":
    key = jax.random.PRNGKey(0)
    k1, k2, k3 = jax.random.split(key, 3)

    B, C, H, W = 2, 4, 16, 16          # small NCHW images
    D = 128                            # embedding dim (lane-aligned)
    F = C * H * W

    # Keep everything bf16 in HBM (halves the dominant W stream); the kernel
    # accumulates in f32.
    first_image = jax.random.normal(k1, (B, C, H, W), jnp.float32).astype(jnp.bfloat16)
    second_image = jax.random.normal(k2, (B, C, H, W), jnp.float32).astype(jnp.bfloat16)
    # TODO(synk): the original module wraps an arbitrary face_recognition CNN;
    # synthesized here as a deterministic single linear projection.
    w_embed = (jax.random.normal(k3, (F, D), jnp.float32) * 0.02).astype(jnp.bfloat16)

    # auto-chosen tile (single block at these toy sizes)
    for same_id in (True, False):
        loss = switch_loss(first_image, second_image, w_embed, same_id=same_id)
        jax.block_until_ready(loss)
        ref = _reference(first_image, second_image, w_embed, same_id)
        assert jnp.allclose(loss, ref, atol=1e-3, rtol=1e-3), (same_id, loss, ref)

    # force a multi-step F-tiled grid to exercise the pipelined accumulation
    for same_id in (True, False):
        loss_tiled = switch_loss(
            first_image, second_image, w_embed, same_id=same_id, tk=256
        )
        jax.block_until_ready(loss_tiled)
        ref_t = _reference(first_image, second_image, w_embed, same_id)
        assert jnp.allclose(loss_tiled, ref_t, atol=1e-3, rtol=1e-3), (
            same_id, loss_tiled, ref_t)

    print("KERNEL_OK")
</pallas_src>

<mosaic_0001>
module attributes {stable_mosaic.version = 11 : i64} {
  func.func @kernel(%arg0: i32, %arg1: memref<2x1024xbf16, #tpu.memory_space<vmem>>, %arg2: memref<2x1024xbf16, #tpu.memory_space<vmem>>, %arg3: memref<1024x128xbf16, #tpu.memory_space<vmem>>, %arg4: memref<1x1xf32, #tpu.memory_space<smem>>, %arg5: memref<2x128xf32, #tpu.memory_space<vmem>>, %arg6: memref<2x128xf32, #tpu.memory_space<vmem>>) attributes {dimension_semantics = [#tpu.dimension_semantics<arbitrary>], iteration_bounds = array<i64: 1>, scalar_prefetch = 0 : i64, scratch_operands = 2 : i64, tpu.core_type = #tpu.core_type<tc>, window_params = [{transform_indices = @transform_0, window_bounds = array<i64: 2, 1024>}, {transform_indices = @transform_1, window_bounds = array<i64: 2, 1024>}, {transform_indices = @transform_2, window_bounds = array<i64: 1024, 128>}, {transform_indices = @transform_3, window_bounds = array<i64: 1, 1>}]} {
    %c0_i32 = arith.constant 0 : i32
    %0 = arith.cmpi eq, %arg0, %c0_i32 : i32
    %1 = arith.extui %0 : i1 to i32
    %c0_i32_0 = arith.constant 0 : i32
    %2 = arith.cmpi ne, %1, %c0_i32_0 : i32
    scf.if %2 {
      %cst_17 = arith.constant 0.000000e+00 : f32
      %17 = vector.broadcast %cst_17 : f32 to vector<2x128xf32>
      %c0_18 = arith.constant 0 : index
      %c0_19 = arith.constant 0 : index
      %18 = vector.load %arg5[%c0_18, %c0_19] : memref<2x128xf32, #tpu.memory_space<vmem>>, vector<2x128xf32>
      tpu.vector_store %arg5[%c0_18, %c0_19], %17 {strides = array<i32>} : memref<2x128xf32, #tpu.memory_space<vmem>>, vector<2x128xf32>,
      %cst_20 = arith.constant 0.000000e+00 : f32
      %19 = vector.broadcast %cst_20 : f32 to vector<2x128xf32>
      %c0_21 = arith.constant 0 : index
      %c0_22 = arith.constant 0 : index
      %20 = vector.load %arg6[%c0_21, %c0_22] : memref<2x128xf32, #tpu.memory_space<vmem>>, vector<2x128xf32>
      tpu.vector_store %arg6[%c0_21, %c0_22], %19 {strides = array<i32>} : memref<2x128xf32, #tpu.memory_space<vmem>>, vector<2x128xf32>,
    } else {
    }
    %c0 = arith.constant 0 : index
    %c0_1 = arith.constant 0 : index
    %3 = vector.load %arg3[%c0, %c0_1] : memref<1024x128xbf16, #tpu.memory_space<vmem>>, vector<1024x128xbf16>
    %c0_2 = arith.constant 0 : index
    %c0_3 = arith.constant 0 : index
    %4 = vector.load %arg5[%c0_2, %c0_3] : memref<2x128xf32, #tpu.memory_space<vmem>>, vector<2x128xf32>
    %c0_4 = arith.constant 0 : index
    %c0_5 = arith.constant 0 : index
    %5 = vector.load %arg1[%c0_4, %c0_5] : memref<2x1024xbf16, #tpu.memory_space<vmem>>, vector<2x1024xbf16>
    %cst = arith.constant dense<0.000000e+00> : vector<2x128xf32>
    %6 = tpu.matmul %5, %3, %cst {dimension_numbers = #tpu.dot_dimension_numbers<[1], [0], [0], [1], [0, 0, 1, 1], [], []>} : vector<2x1024xbf16>, vector<1024x128xbf16>, vector<2x128xf32> -> vector<2x128xf32>
    %7 = arith.addf %4, %6 : vector<2x128xf32>
    %c0_6 = arith.constant 0 : index
    %c0_7 = arith.constant 0 : index
    %8 = vector.load %arg5[%c0_6, %c0_7] : memref<2x128xf32, #tpu.memory_space<vmem>>, vector<2x128xf32>
    tpu.vector_store %arg5[%c0_6, %c0_7], %7 {strides = array<i32>} : memref<2x128xf32, #tpu.memory_space<vmem>>, vector<2x128xf32>,
    %c0_8 = arith.constant 0 : index
    %c0_9 = arith.constant 0 : index
    %9 = vector.load %arg6[%c0_8, %c0_9] : memref<2x128xf32, #tpu.memory_space<vmem>>, vector<2x128xf32>
    %c0_10 = arith.constant 0 : index
    %c0_11 = arith.constant 0 : index
    %10 = vector.load %arg2[%c0_10, %c0_11] : memref<2x1024xbf16, #tpu.memory_space<vmem>>, vector<2x1024xbf16>
    %cst_12 = arith.constant dense<0.000000e+00> : vector<2x128xf32>
    %11 = tpu.matmul %10, %3, %cst_12 {dimension_numbers = #tpu.dot_dimension_numbers<[1], [0], [0], [1], [0, 0, 1, 1], [], []>} : vector<2x1024xbf16>, vector<1024x128xbf16>, vector<2x128xf32> -> vector<2x128xf32>
    %12 = arith.addf %9, %11 : vector<2x128xf32>
    %c0_13 = arith.constant 0 : index
    %c0_14 = arith.constant 0 : index
    %13 = vector.load %arg6[%c0_13, %c0_14] : memref<2x128xf32, #tpu.memory_space<vmem>>, vector<2x128xf32>
    tpu.vector_store %arg6[%c0_13, %c0_14], %12 {strides = array<i32>} : memref<2x128xf32, #tpu.memory_space<vmem>>, vector<2x128xf32>,
    %c0_i32_15 = arith.constant 0 : i32
    %14 = arith.cmpi eq, %arg0, %c0_i32_15 : i32
    %15 = arith.extui %14 : i1 to i32
    %c0_i32_16 = arith.constant 0 : i32
    %16 = arith.cmpi ne, %15, %c0_i32_16 : i32
    scf.if %16 {
      %c0_17 = arith.constant 0 : index
      %c0_18 = arith.constant 0 : index
      %17 = vector.load %arg5[%c0_17, %c0_18] : memref<2x128xf32, #tpu.memory_space<vmem>>, vector<2x128xf32>
      %c0_19 = arith.constant 0 : index
      %c0_20 = arith.constant 0 : index
      %18 = vector.load %arg6[%c0_19, %c0_20] : memref<2x128xf32, #tpu.memory_space<vmem>>, vector<2x128xf32>
      %19 = arith.mulf %17, %18 : vector<2x128xf32>
      %cst_21 = arith.constant dense<0.000000e+00> : vector<2xf32>
      %20 = vector.multi_reduction <add>, %19, %cst_21 [1] : vector<2x128xf32> to vector<2xf32>
      %21 = vector.shape_cast %20 : vector<2xf32> to vector<2x1xf32>
      %22 = arith.mulf %17, %17 : vector<2x128xf32>
      %cst_22 = arith.constant dense<0.000000e+00> : vector<2xf32>
      %23 = vector.multi_reduction <add>, %22, %cst_22 [1] : vector<2x128xf32> to vector<2xf32>
      %24 = vector.shape_cast %23 : vector<2xf32> to vector<2x1xf32>
      %25 = arith.mulf %18, %18 : vector<2x128xf32>
      %cst_23 = arith.constant dense<0.000000e+00> : vector<2xf32>
      %26 = vector.multi_reduction <add>, %25, %cst_23 [1] : vector<2x128xf32> to vector<2xf32>
      %27 = vector.shape_cast %26 : vector<2xf32> to vector<2x1xf32>
      %28 = arith.mulf %24, %27 : vector<2x1xf32>
      %cst_24 = arith.constant 1.000000e-16 : f32
      %29 = vector.broadcast %cst_24 : f32 to vector<2x1xf32>
      %30 = arith.maximumf %28, %29 : vector<2x1xf32>
      %31 = math.rsqrt %30 : vector<2x1xf32>
      %32 = arith.mulf %21, %31 : vector<2x1xf32>
      %cst_25 = arith.constant 1.000000e+00 : f32
      %33 = vector.broadcast %cst_25 : f32 to vector<2x1xf32>
      %34 = arith.addf %32, %33 : vector<2x1xf32>
      %cst_26 = arith.constant 5.000000e-01 : f32
      %35 = vector.broadcast %cst_26 : f32 to vector<2x1xf32>
      %36 = arith.mulf %34, %35 : vector<2x1xf32>
      %cst_27 = arith.constant 0.000000e+00 : f32
      %cst_28 = arith.constant 1.000000e+00 : f32
      %37 = vector.broadcast %cst_27 : f32 to vector<2x1xf32>
      %38 = arith.maximumf %37, %36 : vector<2x1xf32>
      %39 = vector.broadcast %cst_28 : f32 to vector<2x1xf32>
      %40 = arith.minimumf %39, %38 : vector<2x1xf32>
      %41 = math.log %40 : vector<2x1xf32>
      %cst_29 = arith.constant -1.000000e+02 : f32
      %42 = vector.broadcast %cst_29 : f32 to vector<2x1xf32>
      %43 = arith.maximumf %41, %42 : vector<2x1xf32>
      %44 = vector.shape_cast %43 : vector<2x1xf32> to vector<1x2x1xf32>
      %cst_30 = arith.constant dense<0.000000e+00> : vector<1xf32>
      %45 = vector.multi_reduction <add>, %44, %cst_30 [1, 2] : vector<1x2x1xf32> to vector<1xf32>
      %46 = vector.shape_cast %45 : vector<1xf32> to vector<1x1x1xf32>
      %47 = vector.extract %46[0, 0, 0] : f32 from vector<1x1x1xf32>
      %cst_31 = arith.constant 2.000000e+00 : f32
      %48 = arith.divf %47, %cst_31 : f32
      %cst_32 = arith.constant 0.000000e+00 : f32
      %49 = arith.subf %cst_32, %48 : f32
      %c0_33 = arith.constant 0 : index
      %c0_34 = arith.constant 0 : index
      %50 = memref.load %arg4[%c0_33, %c0_34] : memref<1x1xf32, #tpu.memory_space<smem>>
      memref.store %49, %arg4[%c0_33, %c0_34] : memref<1x1xf32, #tpu.memory_space<smem>>
    } else {
    }
    return
  }
  func.func @transform_0(%arg0: i32) -> (i32, i32) {
    %c0_i32 = arith.constant 0 : i32
    %c0_i32_0 = arith.constant 0 : i32
    return %c0_i32, %arg0 : i32, i32
  }
  func.func @transform_1(%arg0: i32) -> (i32, i32) {
    %c0_i32 = arith.constant 0 : i32
    %c0_i32_0 = arith.constant 0 : i32
    return %c0_i32, %arg0 : i32, i32
  }
  func.func @transform_2(%arg0: i32) -> (i32, i32) {
    %c0_i32 = arith.constant 0 : i32
    %c0_i32_0 = arith.constant 0 : i32
    return %arg0, %c0_i32 : i32, i32
  }
  func.func @transform_3(%arg0: i32) -> (i32, i32) {
    %c0_i32 = arith.constant 0 : i32
    %c0_i32_0 = arith.constant 0 : i32
    %c0_i32_1 = arith.constant 0 : i32
    return %c0_i32, %c0_i32_0 : i32, i32
  }
}

</mosaic_0001>

<bundles_post_ra>
// kernel: tpu_custom_call.1
= control target key start
LH: loop header
LB: loop body
LE: loop exit
PB: predicated region body
PF: predicated region fallthrough
CT: control target
= control target key end

     0   :  { %8 = vsyncpa [#allocation5], 0  ;;  %s1832_s0 = inlined_call_operand.hbm [shape: bf16[2,1024], index: 0, kind: input, shape index: {}]   ;;  %s1833_s1 = inlined_call_operand.hbm [shape: bf16[2,1024], index: 1, kind: input, shape index: {}]   ;;  %s1834_s2 = inlined_call_operand.hbm [shape: bf16[1024,128], index: 2, kind: input, shape index: {}]   ;;  %s1835_s3 = inlined_call_operand.hbm [shape: f32[1,1], index: 3, kind: output, shape index: {}]  }
   0x1   :  { %9 = vsyncpa [#allocation8], 0 }
   0x2   :  { %10 = vsyncpa [#allocation6], 0  ;;  %s1478_s12 = smov [#allocation7]   ;;  %s1479_s14 = smov [#allocation4]  }
   0x3   :  { %s27_s13 = sshll.u32 %s1478_s12, 4  ;;  %s17_s15 = sshll.u32 %s1479_s14, 4  ;;  %s28_s13 = int_to_ptr.vmem [resolvable:$true] %s27_s13  ;;  %s18_s15 = int_to_ptr.vmem [resolvable:$true] %s17_s15 }
   0x4   :  { %s1396_s18 = scalar_lea.hbm %s1833_s1, 128 }
   0x5   :  { %p1397_p0 = scmp.ne.s32.totalorder %s1833_s1, %s1396_s18  ;;  %p1400_p1 = scmp.lt.u32.totalorder %s1396_s18, %s1833_s1 }
   0x7   :  { %p1402_p2 = pnand %p1400_p1, %p1397_p0 }
   0x9   :  { %1405 = shalt.err (!%p1402_p2)
}
   0xa   :  { %s1406_s23 = scalar_lea.vmem %s28_s13, 128  ;;  %p1411_p4 = scmp.lt.s32.totalorder %s28_s13, %s28_s13 }
   0xb   :  { %p1407_p3 = scmp.ne.s32.totalorder %s28_s13, %s1406_s23  ;;  %p1412_p5 = scmp.lt.s32.totalorder %s1406_s23, %s1406_s23 }
   0xd   :  { %p1413_p6 = por %p1412_p5, %p1411_p4 }
   0xf   :  { %p1414_p7 = pnand %p1413_p6, %p1407_p3 }
  0x11   :  { %1417 = shalt.err (!%p1414_p7)
}
  0x12   :  { %30 = dma.hbm_to_vmem [thread:$0]  %s1833_s1, 128, %s28_s13, [#allocation8]  }
  0x13   :  { %s1418_s28 = scalar_lea.hbm %s1832_s0, 128 }
  0x14   :  { %p1419_p8 = scmp.ne.s32.totalorder %s1832_s0, %s1418_s28  ;;  %p1422_p9 = scmp.lt.u32.totalorder %s1418_s28, %s1832_s0 }
  0x16   :  { %p1424_p10 = pnand %p1422_p9, %p1419_p8 }
  0x18   :  { %1427 = shalt.err (!%p1424_p10)
}
  0x19   :  { %s1428_s6 = scalar_lea.vmem %s18_s15, 128  ;;  %p1433_p12 = scmp.lt.s32.totalorder %s18_s15, %s18_s15 }
  0x1a   :  { %p1429_p11 = scmp.ne.s32.totalorder %s18_s15, %s1428_s6  ;;  %p1434_p13 = scmp.lt.s32.totalorder %s1428_s6, %s1428_s6 }
  0x1c   :  { %p1435_p0 = por %p1434_p13, %p1433_p12 }
  0x1e   :  { %p1436_p1 = pnand %p1435_p0, %p1429_p11 }
  0x20   :  { %1439 = shalt.err (!%p1436_p1)
}
  0x21   :  { %20 = dma.hbm_to_vmem [thread:$0]  %s1832_s0, 128, %s18_s15, [#allocation5]  }
  0x22   :  { %s1480_s8 = smov [#allocation9]   ;;  %s1440_s12 = scalar_lea.hbm %s1834_s2, 8192 }
  0x23   :  { %s36_s9 = sshll.u32 %s1480_s8, 4  ;;  %p1441_p2 = scmp.ne.s32.totalorder %s1834_s2, %s1440_s12  ;;  %s37_s9 = int_to_ptr.vmem [resolvable:$true] %s36_s9 }
  0x24   :  { %p1444_p3 = scmp.lt.u32.totalorder %s1440_s12, %s1834_s2 }
  0x26   :  { %p1446_p4 = pnand %p1444_p3, %p1441_p2 }
  0x28   :  { %1449 = shalt.err (!%p1446_p4)
}
  0x29   :  { %s1450_s18 = scalar_lea.vmem %s37_s9, 8192  ;;  %p1455_p6 = scmp.lt.s32.totalorder %s37_s9, %s37_s9 }
  0x2a   :  { %p1451_p5 = scmp.ne.s32.totalorder %s37_s9, %s1450_s18  ;;  %p1456_p7 = scmp.lt.s32.totalorder %s1450_s18, %s1450_s18 }
  0x2c   :  { %p1457_p8 = por %p1456_p7, %p1455_p6 }
  0x2e   :  { %p1458_p9 = pnand %p1457_p8, %p1451_p5 }
  0x30   :  { %1461 = shalt.err (!%p1458_p9)
}
  0x31   :  { %s1481_s0 = smov 64   ;;  %s1482_s15 = smov 4  }
  0x32   :  { %42 = dma.hbm_to_vmem [thread:$0]  %s1834_s2, 8192, %s37_s9, [#allocation8], %s1481_s0, %s1481_s0, %s1482_s15  }
  0x33   :  { %1472 = dma.done.wait [#allocation5], 128  }
  0x34   :  { %1473 = vsyncadd [#allocation5], 4294967168 }
  0x35   :  { %1474 = dma.done.wait [#allocation8], 8320  }
  0x36   :  { %1475 = vsyncadd [#allocation8], 4294958976  ;;  %v1542_v0 = vld [vmem:[#allocation9 + $0x40] sm:$0xff]   ;;  %v1553_v4 = vld [vmem:[#allocation9 + $0x48] sm:$0xff]   ;;  %v1483_v22 = vmov 1966171168   ;;  %v194_v24 = vlaneseq }
  0x37   :  { %v1544_v1 = vld [vmem:[#allocation9 + $0xc0] sm:$0xff]   ;;  %1140 = vmatprep.subr.bf16.mxu0 %v1542_v0  ;;  %v1556_v5 = vld [vmem:[#allocation9 + $0xc8] sm:$0xff]   ;;  %v1565_v8 = vld [vmem:[#allocation9 + $0x50] sm:$0xff]   ;;  %v192_v23 = vunpack.c.l.s4 %v1483_v22  ;;  %vm1021_vm0 = vcmask 1041408   ;;  %vm1044_vm1 = vcmask 1024   ;;  %s1462_s25 = scalar_lea.hbm %s1835_s3, 16 }
  0x38   :  { %v1547_v2 = vld [vmem:[#allocation9] sm:$0xff]   ;;  %1162 = vmatprep.subr.bf16.mxu1 %v1544_v1  ;;  %v1559_v6 = vld [vmem:[#allocation9 + $0x8] sm:$0xff]   ;;  %v1568_v9 = vld [vmem:[#allocation9 + $0xd0] sm:$0xff]   ;;  %v195_v30 = vshrl.u32 %v194_v24, 7  ;;  %p1463_p10 = scmp.ne.s32.totalorder %s1835_s3, %s1462_s25  ;;  %p1466_p11 = scmp.lt.u32.totalorder %s1462_s25, %s1835_s3 }
  0x39   :  { %v1550_v3 = vld [vmem:[#allocation9 + $0x80] sm:$0xff]   ;;  %1141 = vmatpush3.bf16.msra.mxu0 %v1547_v2  ;;  %v1562_v7 = vld [vmem:[#allocation9 + $0x88] sm:$0xff]   ;;  %v1571_v10 = vld [vmem:[#allocation9 + $0x10] sm:$0xff]   ;;  %v193_v29 = vunpack.c.0.s8 %v192_v23 }
  0x3a   :  { %1163 = vmatpush3.bf16.msra.mxu1 %v1550_v3  ;;  %1142 = vmatprep.subr.bf16.mxu0 %v1553_v4  ;;  %v1574_v11 = vld [vmem:[#allocation9 + $0x90] sm:$0xff]   ;;  %v1577_v12 = vld [vmem:[#allocation9 + $0x58] sm:$0xff]   ;;  %v1589_v16 = vld [vmem:[#allocation9 + $0x60] sm:$0xff]   ;;  %p1468_p12 = pnand %p1466_p11, %p1463_p10 }
  0x3b   :  { %1164 = vmatprep.subr.bf16.mxu1 %v1556_v5  ;;  %v1580_v13 = vld [vmem:[#allocation9 + $0xd8] sm:$0xff]   ;;  %v1592_v17 = vld [vmem:[#allocation9 + $0xe0] sm:$0xff]   ;;  %v1601_v20 = vld [vmem:[#allocation9 + $0x68] sm:$0xff]   ;;  %v1630_v35 = vsub.s32 %v193_v29, %v195_v30 }
  0x3c   :  { %v1583_v14 = vld [vmem:[#allocation9 + $0x18] sm:$0xff]   ;;  %v1595_v18 = vld [vmem:[#allocation9 + $0x20] sm:$0xff]   ;;  %v1604_v21 = vld [vmem:[#allocation9 + $0xe8] sm:$0xff]  }
  0x3d   :  { %1143 = vmatpush3.bf16.msra.mxu0 %v1559_v6  ;;  %v1586_v15 = vld [vmem:[#allocation9 + $0x98] sm:$0xff]   ;;  %v1598_v19 = vld [vmem:[#allocation9 + $0xa0] sm:$0xff]   ;;  %v1607_v25 = vld [vmem:[#allocation9 + $0x28] sm:$0xff]  }
  0x3e   :  { %1165 = vmatpush3.bf16.msra.mxu1 %v1562_v7  ;;  %1144 = vmatprep.subr.bf16.mxu0 %v1565_v8  ;;  %v1610_v26 = vld [vmem:[#allocation9 + $0xa8] sm:$0xff]   ;;  %v1613_v27 = vld [vmem:[#allocation9 + $0x70] sm:$0xff]   ;;  %v1625_v33 = vld [vmem:[#allocation9 + $0x78] sm:$0xff]  }
  0x3f   :  { %1166 = vmatprep.subr.bf16.mxu1 %v1568_v9  ;;  %v1616_v28 = vld [vmem:[#allocation9 + $0xf0] sm:$0xff]   ;;  %v1628_v34 = vld [vmem:[#allocation9 + $0xf8] sm:$0xff]   ;;  %v1641_v41 = vld [vmem:[#allocation9 + $0x140] sm:$0xff]  }
  0x40   :  { %v1619_v31 = vld [vmem:[#allocation9 + $0x30] sm:$0xff]   ;;  %v1633_v36 = vld [vmem:[#allocation9 + $0x38] sm:$0xff]   ;;  %v1643_v42 = vld [vmem:[#allocation9 + $0x1c0] sm:$0xff]  }
  0x41   :  { %1145 = vmatpush3.bf16.msra.mxu0 %v1571_v10  ;;  %v1622_v32 = vld [vmem:[#allocation9 + $0xb0] sm:$0xff]   ;;  %v1636_v37 = vld [vmem:[#allocation9 + $0xb8] sm:$0xff]   ;;  %v1652_v47 = vld [vmem:[#allocation9 + $0x100] sm:$0xff]  }
  0x42   :  { %1167 = vmatpush3.bf16.msra.mxu1 %v1574_v11  ;;  %1146 = vmatprep.subr.bf16.mxu0 %v1577_v12  ;;  %v188_v38 = vld [vmem:[#allocation4] sm:$0xff]  ;;  %v1656_v50 = vld [vmem:[#allocation9 + $0x148] sm:$0xff]   ;;  %v1658_v52 = vld [vmem:[#allocation9 + $0x180] sm:$0xff]  }
  0x43   :  { %1168 = vmatprep.subr.bf16.mxu1 %v1580_v13  ;;  %v190_v39 = vcombine.high %v188_v38, %v188_v38  ;;  %v197_v40 = vrot.slane %v188_v38, %v1630_v35  ;;  %v1661_v54 = vld [vmem:[#allocation9 + $0x1c8] sm:$0xff]   ;;  %v1667_v57 = vld [vmem:[#allocation9 + $0x150] sm:$0xff]   ;;  %v1679_v61 = vld [vmem:[#allocation9 + $0x158] sm:$0xff]  }
  0x44   :  { %v1664_v55 = vld [vmem:[#allocation9 + $0x108] sm:$0xff]   ;;  %v1673_v59 = vld [vmem:[#allocation9 + $0x1d0] sm:$0xff]   ;;  %v1685_v63 = vld [vmem:[#allocation9 + $0x1d8] sm:$0xff]  }
  0x45   :  { %1147 = vmatpush3.bf16.msra.mxu0 %v1583_v14  ;;  %v205_v43 = vcombine.high %v197_v40, %v197_v40  ;;  %v213_v44 = vrot.slane %v197_v40, %v1630_v35  ;;  %v1648_v45 = vrot.slane %v190_v39, %v1630_v35  ;;  %v1670_v58 = vld [vmem:[#allocation9 + $0x188] sm:$0xff]   ;;  %v1676_v60 = vld [vmem:[#allocation9 + $0x110] sm:$0xff]   ;;  %v1688_v22 = vld [vmem:[#allocation9 + $0x118] sm:$0xff]  }
  0x46   :  { %1169 = vmatpush3.bf16.msra.mxu1 %v1586_v15  ;;  %1148 = vmatprep.subr.bf16.mxu0 %v1589_v16  ;;  %v1682_v62 = vld [vmem:[#allocation9 + $0x190] sm:$0xff]   ;;  %v1691_v23 = vld [vmem:[#allocation9 + $0x160] sm:$0xff]   ;;  %v1694_v24 = vld [vmem:[#allocation9 + $0x198] sm:$0xff]  }
  0x47   :  { %1170 = vmatprep.subr.bf16.mxu1 %v1592_v17  ;;  %v227_v46 = vrot.slane %v205_v43, %v1630_v35  ;;  %v206_v48 = vcombine.high %v1648_v45, %v1648_v45  ;;  %v235_v49 = vcombine.high %v213_v44, %v213_v44  ;;  %v1697_v29 = vld [vmem:[#allocation9 + $0x1e0] sm:$0xff]   ;;  %v1703_v38 = vld [vmem:[#allocation9 + $0x168] sm:$0xff]  }
  0x48   :  { %v1700_v30 = vld [vmem:[#allocation9 + $0x120] sm:$0xff]   ;;  %1845 = vst [vmem:[#allocation14_spill] sm:$0xff] %v1703_v38  ;;  %v1709_v40 = vld [vmem:[#allocation9 + $0x1e8] sm:$0xff]  }
  0x49   :  { %1149 = vmatpush3.bf16.msra.mxu0 %v1595_v18  ;;  %663 = vmatprep.mubr.bf16.mxu0 %v227_v46  ;;  %v237_v51 = vcombine.high %v227_v46, %v227_v46  ;;  %v234_v53 = vrot.slane %v206_v48, %v1630_v35  ;;  %v1706_v39 = vld [vmem:[#allocation9 + $0x1a0] sm:$0xff]   ;;  %1847 = vst [vmem:[#allocation16_spill] sm:$0xff] %v1709_v40  ;;  %v1712_v43 = vld [vmem:[#allocation9 + $0x128] sm:$0xff]   ;;  %v1721_v48 = vld [vmem:[#allocation9 + $0x1f0] sm:$0xff]  }
  0x4a   :  { %1171 = vmatpush3.bf16.msra.mxu1 %v1598_v19  ;;  %1150 = vmatprep.subr.bf16.mxu0 %v1601_v20  ;;  %1846 = vst [vmem:[#allocation15_spill] sm:$0xff] %v1706_v39  ;;  %1848 = vst [vmem:[#allocation17_spill] sm:$0xff] %v1712_v43  ;;  %v1718_v46 = vld [vmem:[#allocation9 + $0x1a8] sm:$0xff]  }
  0x4b   :  { %1172 = vmatprep.subr.bf16.mxu1 %v1604_v21  ;;  %703 = vmatprep.mubr.bf16.mxu1 %v237_v51  ;;  %v238_v56 = vcombine.high %v234_v53, %v234_v53  ;;  %1850 = vst [vmem:[#allocation19_spill] sm:$0xff] %v1718_v46  ;;  %1851 = vst [vmem:[#allocation20_spill] sm:$0xff] %v1721_v48  ;;  %v1727_v51 = vld [vmem:[#allocation9 + $0x178] sm:$0xff]  }
  0x4c   :  { %1853 = vst [vmem:[#allocation22_spill] sm:$0xff] %v1727_v51 }
  0x4d   :  { %1151 = vmatpush3.bf16.msra.mxu0 %v1607_v25 }
  0x4e   :  { %1173 = vmatpush3.bf16.msra.mxu1 %v1610_v26  ;;  %1152 = vmatprep.subr.bf16.mxu0 %v1613_v27 }
  0x4f   :  { %1174 = vmatprep.subr.bf16.mxu1 %v1616_v28 }
  0x51   :  { %1153 = vmatpush3.bf16.msra.mxu0 %v1619_v31 }
  0x52   :  { %1175 = vmatpush3.bf16.msra.mxu1 %v1622_v32  ;;  %1154 = vmatprep.subr.bf16.mxu0 %v1625_v33 }
  0x53   :  { %1176 = vmatprep.subr.bf16.mxu1 %v1628_v34 }
  0x55   :  { %1155 = vmatpush3.bf16.msra.mxu0 %v1633_v36 }
  0x56   :  { %1177 = vmatpush3.bf16.msra.mxu1 %v1636_v37  ;;  %1184 = vmatprep.subr.bf16.mxu0 %v1641_v41 }
  0x57   :  { %1206 = vmatprep.subr.bf16.mxu1 %v1643_v42 }
  0x58   :  { %664 = vmatmul.mubr.bf16.vlgmr.msra.gmra.mrb[0].mxu0 %v213_v44  ;;  %v1715_v44 = vld [vmem:[#allocation9 + $0x170] sm:$0xff]  }
  0x59   :  { %1185 = vmatpush3.bf16.msra.mxu0 %v1652_v47  ;;  %704 = vmatmul.mubr.bf16.vlgmr.msra.gmra.mrb[0].mxu1 %v235_v49  ;;  %1849 = vst [vmem:[#allocation18_spill] sm:$0xff] %v1715_v44  ;;  %v1724_v49 = vld [vmem:[#allocation9 + $0x130] sm:$0xff]  }
  0x5a   :  { %1186 = vmatprep.subr.bf16.mxu0 %v1656_v50  ;;  %1207 = vmatpush3.bf16.msra.mxu1 %v1658_v52  ;;  %1852 = vst [vmem:[#allocation21_spill] sm:$0xff] %v1724_v49 }
  0x5b   :  { %743 = vmatprep.mubr.bf16.mxu0 %v234_v53  ;;  %1208 = vmatprep.subr.bf16.mxu1 %v1661_v54  ;;  %v1730_v53 = vld [vmem:[#allocation9 + $0x1b0] sm:$0xff]  }
  0x5c   :  { %783 = vmatprep.mubr.bf16.mxu1 %v238_v56  ;;  %v1733_v56 = vld [vmem:[#allocation9 + $0x1f8] sm:$0xff]  }
  0x5d   :  { %1187 = vmatpush3.bf16.msra.mxu0 %v1664_v55 }
  0x5e   :  { %1188 = vmatprep.subr.bf16.mxu0 %v1667_v57  ;;  %1209 = vmatpush3.bf16.msra.mxu1 %v1670_v58 }
  0x5f   :  { %1210 = vmatprep.subr.bf16.mxu1 %v1673_v59 }
  0x61   :  { %1189 = vmatpush3.bf16.msra.mxu0 %v1676_v60 }
  0x62   :  { %1190 = vmatprep.subr.bf16.mxu0 %v1679_v61  ;;  %1211 = vmatpush3.bf16.msra.mxu1 %v1682_v62 }
  0x63   :  { %1212 = vmatprep.subr.bf16.mxu1 %v1685_v63 }
  0x65   :  { %1191 = vmatpush3.bf16.msra.mxu0 %v1688_v22 }
  0x66   :  { %1192 = vmatprep.subr.bf16.mxu0 %v1691_v23  ;;  %1213 = vmatpush3.bf16.msra.mxu1 %v1694_v24 }
  0x67   :  { %1214 = vmatprep.subr.bf16.mxu1 %v1697_v29 }
  0x69   :  { %1193 = vmatpush3.bf16.msra.mxu0 %v1700_v30 }
  0x6a   :  { %1194 = vmatprep.subr.bf16.mxu0 %v1703_v38  ;;  %1215 = vmatpush3.bf16.msra.mxu1 %v1706_v39  ;;  %v794_v39 = vld [vmem:[#allocation7] sm:$0xff] }
  0x6b   :  { %1216 = vmatprep.subr.bf16.mxu1 %v1709_v40  ;;  %v1736_v40 = vld [vmem:[#allocation9 + $0x138] sm:$0xff]  }
  0x6d   :  { %1195 = vmatpush3.bf16.msra.mxu0 %v1712_v43  ;;  %v803_v43 = vrot.slane %v794_v39, %v1630_v35 }
  0x6e   :  { %1196 = vmatprep.subr.bf16.mxu0 %v1715_v44  ;;  %1217 = vmatpush3.bf16.msra.mxu1 %v1718_v46  ;;  %v220_v44 = vrot.slane %v1648_v45, %v1630_v35  ;;  %v1743_v46 = vld [vmem:[#allocation9 + $0x1b8] sm:$0xff]  }
  0x6f   :  { %1218 = vmatprep.subr.bf16.mxu1 %v1721_v48  ;;  %v811_v38 = vcombine.high %v803_v43, %v803_v43 }
  0x70   :  { %v236_v48 = vcombine.high %v220_v44, %v220_v44 }
  0x71   :  { %1197 = vmatpush3.bf16.msra.mxu0 %v1724_v49  ;;  %v833_v49 = vrot.slane %v811_v38, %v1630_v35 }
  0x72   :  { %1198 = vmatprep.subr.bf16.mxu0 %v1727_v51  ;;  %1219 = vmatpush3.bf16.msra.mxu1 %v1730_v53 }
  0x73   :  { %1220 = vmatprep.subr.bf16.mxu1 %v1733_v56  ;;  %v843_v51 = vcombine.high %v833_v49, %v833_v49 }
  0x75   :  { %1199 = vmatpush3.bf16.msra.mxu0 %v1736_v40 }
  0x76   :  { %1228 = vmatprep.subr.bf16.mxu0 %v1542_v0  ;;  %1221 = vmatpush3.bf16.msra.mxu1 %v1743_v46  ;;  %v796_v0 = vcombine.high %v794_v39, %v794_v39 }
  0x77   :  { %1250 = vmatprep.subr.bf16.mxu1 %v1544_v1 }
  0x78   :  { %744 = vmatmul.mubr.bf16.vlgmr.msra.gmra.mrb[4].mxu0 %v220_v44  ;;  %v810_v1 = vrot.slane %v796_v0, %v1630_v35 }
  0x79   :  { %1229 = vmatpush3.bf16.msra.mxu0 %v1547_v2  ;;  %885 = vmatprep.mubr.bf16.mxu0 %v833_v49 }
  0x7a   :  { %784 = vmatmul.mubr.bf16.vlgmr.msra.gmra.mrb[4].mxu1 %v236_v48  ;;  %1230 = vmatprep.subr.bf16.mxu0 %v1553_v4  ;;  %v812_v2 = vcombine.high %v810_v1, %v810_v1 }
  0x7b   :  { %1251 = vmatpush3.bf16.msra.mxu1 %v1550_v3  ;;  %925 = vmatprep.mubr.bf16.mxu1 %v843_v51  ;;  %v819_v3 = vrot.slane %v803_v43, %v1630_v35 }
  0x7c   :  { %1252 = vmatprep.subr.bf16.mxu1 %v1556_v5  ;;  %v840_v4 = vrot.slane %v812_v2, %v1630_v35 }
  0x7d   :  { %1231 = vmatpush3.bf16.msra.mxu0 %v1559_v6  ;;  %v841_v5 = vcombine.high %v819_v3, %v819_v3 }
  0x7e   :  { %1232 = vmatprep.subr.bf16.mxu0 %v1565_v8  ;;  %v844_v6 = vcombine.high %v840_v4, %v840_v4  ;;  %v1855_v8 = vld [vmem:[#allocation15_spill] sm:$0xff] }
  0x7f   :  { %1253 = vmatpush3.bf16.msra.mxu1 %v1562_v7  ;;  %v1854_v7 = vld [vmem:[#allocation14_spill] sm:$0xff] }
  0x80   :  { %1254 = vmatprep.subr.bf16.mxu1 %v1568_v9  ;;  %v1856_v9 = vld [vmem:[#allocation16_spill] sm:$0xff] }
  0x81   :  { %1233 = vmatpush3.bf16.msra.mxu0 %v1571_v10  ;;  %v1857_v10 = vld [vmem:[#allocation17_spill] sm:$0xff] }
  0x82   :  { %1234 = vmatprep.subr.bf16.mxu0 %v1577_v12  ;;  %v1859_v12 = vld [vmem:[#allocation19_spill] sm:$0xff] }
  0x83   :  { %1255 = vmatpush3.bf16.msra.mxu1 %v1574_v11  ;;  %v1858_v11 = vld [vmem:[#allocation18_spill] sm:$0xff] }
  0x84   :  { %1256 = vmatprep.subr.bf16.mxu1 %v1580_v13  ;;  %v1860_v13 = vld [vmem:[#allocation20_spill] sm:$0xff] }
  0x85   :  { %1235 = vmatpush3.bf16.msra.mxu0 %v1583_v14  ;;  %v1861_v14 = vld [vmem:[#allocation21_spill] sm:$0xff] }
  0x86   :  { %1236 = vmatprep.subr.bf16.mxu0 %v1589_v16  ;;  %v826_v16 = vrot.slane %v810_v1, %v1630_v35 }
  0x87   :  { %1257 = vmatpush3.bf16.msra.mxu1 %v1586_v15  ;;  %v1862_v15 = vld [vmem:[#allocation22_spill] sm:$0xff] }
  0x88   :  { %1258 = vmatprep.subr.bf16.mxu1 %v1592_v17  ;;  %v842_v17 = vcombine.high %v826_v16, %v826_v16 }
  0x89   :  { %1237 = vmatpush3.bf16.msra.mxu0 %v1595_v18  ;;  %v1484_v18 = vmov 0.0  }
  0x8a   :  { %1238 = vmatprep.subr.bf16.mxu0 %v1601_v20  ;;  %57 = vst [vmem:[#allocation2] sm:$0x3] %v1484_v18  ;;  %58 = vst [vmem:[#allocation3] sm:$0x3] %v1484_v18 }
  0x8b   :  { %1259 = vmatpush3.bf16.msra.mxu1 %v1598_v19 }
  0x8c   :  { %1260 = vmatprep.subr.bf16.mxu1 %v1604_v21 }
  0x8d   :  { %1239 = vmatpush3.bf16.msra.mxu0 %v1607_v25 }
  0x8e   :  { %1240 = vmatprep.subr.bf16.mxu0 %v1613_v27 }
  0x8f   :  { %1261 = vmatpush3.bf16.msra.mxu1 %v1610_v26 }
  0x90   :  { %1262 = vmatprep.subr.bf16.mxu1 %v1616_v28 }
  0x91   :  { %1241 = vmatpush3.bf16.msra.mxu0 %v1619_v31 }
  0x92   :  { %1242 = vmatprep.subr.bf16.mxu0 %v1625_v33 }
  0x93   :  { %1263 = vmatpush3.bf16.msra.mxu1 %v1622_v32 }
  0x94   :  { %1264 = vmatprep.subr.bf16.mxu1 %v1628_v34 }
  0x95   :  { %1243 = vmatpush3.bf16.msra.mxu0 %v1633_v36 }
  0x96   :  { %1272 = vmatprep.subr.bf16.mxu0 %v1641_v41 }
  0x97   :  { %1265 = vmatpush3.bf16.msra.mxu1 %v1636_v37 }
  0x98   :  { %886 = vmatmul.mubr.bf16.vlgmr.msra.gmra.mrb[8].mxu0 %v819_v3  ;;  %1294 = vmatprep.subr.bf16.mxu1 %v1643_v42 }
  0x99   :  { %1273 = vmatpush3.bf16.msra.mxu0 %v1652_v47  ;;  %965 = vmatprep.mubr.bf16.mxu0 %v840_v4  ;;  %v793_v4 = vld [vmem:[#allocation3] sm:$0x3] }
  0x9a   :  { %926 = vmatmul.mubr.bf16.vlgmr.msra.gmra.mrb[8].mxu1 %v841_v5  ;;  %1274 = vmatprep.subr.bf16.mxu0 %v1656_v50 }
  0x9b   :  { %1295 = vmatpush3.bf16.msra.mxu1 %v1658_v52  ;;  %1005 = vmatprep.mubr.bf16.mxu1 %v844_v6 }
  0x9c   :  { %1296 = vmatprep.subr.bf16.mxu1 %v1661_v54 }
  0x9d   :  { %1275 = vmatpush3.bf16.msra.mxu0 %v1664_v55  ;;  %v187_v55 = vld [vmem:[#allocation2] sm:$0x3] }
  0x9e   :  { %1276 = vmatprep.subr.bf16.mxu0 %v1667_v57 }
  0x9f   :  { %1297 = vmatpush3.bf16.msra.mxu1 %v1670_v58 }
  0xa0   :  { %1298 = vmatprep.subr.bf16.mxu1 %v1673_v59 }
  0xa1   :  { %1277 = vmatpush3.bf16.msra.mxu0 %v1676_v60 }
  0xa2   :  { %1278 = vmatprep.subr.bf16.mxu0 %v1679_v61 }
  0xa3   :  { %1299 = vmatpush3.bf16.msra.mxu1 %v1682_v62 }
  0xa4   :  { %1300 = vmatprep.subr.bf16.mxu1 %v1685_v63 }
  0xa5   :  { %1279 = vmatpush3.bf16.msra.mxu0 %v1688_v22 }
  0xa6   :  { %1280 = vmatprep.subr.bf16.mxu0 %v1691_v23 }
  0xa7   :  { %1301 = vmatpush3.bf16.msra.mxu1 %v1694_v24 }
  0xa8   :  { %1302 = vmatprep.subr.bf16.mxu1 %v1697_v29 }
  0xa9   :  { %1281 = vmatpush3.bf16.msra.mxu0 %v1700_v30 }
  0xaa   :  { %1282 = vmatprep.subr.bf16.mxu0 %v1854_v7 }
  0xab   :  { %1303 = vmatpush3.bf16.msra.mxu1 %v1855_v8 }
  0xac   :  { %1304 = vmatprep.subr.bf16.mxu1 %v1856_v9 }
  0xad   :  { %1283 = vmatpush3.bf16.msra.mxu0 %v1857_v10 }
  0xae   :  { %1284 = vmatprep.subr.bf16.mxu0 %v1858_v11 }
  0xaf   :  { %1305 = vmatpush3.bf16.msra.mxu1 %v1859_v12 }
  0xb0   :  { %1306 = vmatprep.subr.bf16.mxu1 %v1860_v13 }
  0xb1   :  { %1285 = vmatpush3.bf16.msra.mxu0 %v1861_v14 }
  0xb2   :  { %1286 = vmatprep.subr.bf16.mxu0 %v1862_v15 }
  0xb3   :  { %1307 = vmatpush3.bf16.msra.mxu1 %v1730_v53 }
  0xb4   :  { %1308 = vmatprep.subr.bf16.mxu1 %v1733_v56 }
  0xb5   :  { %1287 = vmatpush3.bf16.msra.mxu0 %v1736_v40 }
  0xb7   :  { %1309 = vmatpush3.bf16.msra.mxu1 %v1743_v46 }
  0xb8   :  { %966 = vmatmul.mubr.bf16.vlgmr.msra.gmra.mrb[12].mxu0 %v826_v16 }
  0xba   :  { %1006 = vmatmul.mubr.bf16.vlgmr.msra.gmra.mrb[12].mxu1 %v842_v17 }
 0x12b   :  { %v1156_v19 = vpop.f32.mrb[0].mxu0 }
 0x12c   :  { %v1157_v20 = vpop.f32.mrb[1].mxu0  ;;  %v1178_v21 = vpop.f32.mrb[0].mxu1 }
 0x12d   :  { %v1158_v25 = vadd.f32 %v1157_v20, %v1156_v19  ;;  %v1159_v26 = vpop.f32.mrb[2].mxu0  ;;  %v1179_v27 = vpop.f32.mrb[1].mxu1 }
 0x12e   :  { %v1160_v28 = vpop.f32.mrb[3].mxu0  ;;  %v1180_v31 = vadd.f32 %v1179_v27, %v1178_v21  ;;  %v1181_v32 = vpop.f32.mrb[2].mxu1 }
 0x12f   :  { %v1182_v33 = vpop.f32.mrb[3].mxu1 }
 0x130   :  { %v706_v34 = vadd.f32 %v1180_v31, %v1158_v25 }
 0x14b   :  { %v1200_v35 = vpop.f32.mrb[4].mxu0 }
 0x14c   :  { %v1201_v36 = vpop.f32.mrb[5].mxu0 }
 0x14d   :  { %v1222_v37 = vpop.f32.mrb[4].mxu1  ;;  %v1202_v41 = vadd.f32 %v1201_v36, %v1200_v35  ;;  %v1203_v42 = vpop.f32.mrb[6].mxu0 }
 0x14e   :  { %v1223_v45 = vpop.f32.mrb[5].mxu1  ;;  %v1204_v47 = vpop.f32.mrb[7].mxu0 }
 0x14f   :  { %v746_v50 = vadd.f32 %v1202_v41, %v706_v34  ;;  %v1224_v52 = vadd.f32 %v1223_v45, %v1222_v37  ;;  %v1225_v54 = vpop.f32.mrb[6].mxu1 }
 0x150   :  { %v1226_v57 = vpop.f32.mrb[7].mxu1 }
 0x151   :  { %v786_v58 = vadd.f32 %v1224_v52, %v746_v50 }
 0x153   :  { %v791_v59 = vadd.f32 %v786_v58, %v187_v55 }
 0x155   :  { %792 = vst [vmem:[#allocation2] sm:$0x3] %v791_v59 }
 0x15c   :  { %v1018_v60 = vld [vmem:[#allocation2] sm:$0x3] }
 0x15d   :  { %v1025_v61 = vmul.f32 %v1018_v60, %v1018_v60 }
 0x15f   :  { %v1026_v62 = vsel %vm1021_vm0, %v1025_v61, 0.0 }
 0x160   :  { %1027 = vadd.xlane.f32.xlu0 %v1026_v62 }
 0x16b   :  { %v1244_v63 = vpop.f32.mrb[8].mxu0 }
 0x16c   :  { %v1245_v22 = vpop.f32.mrb[9].mxu0 }
 0x16d   :  { %v1266_v23 = vpop.f32.mrb[8].mxu1  ;;  %v1246_v24 = vadd.f32 %v1245_v22, %v1244_v63  ;;  %v1247_v29 = vpop.f32.mrb[10].mxu0 }
 0x16e   :  { %v1267_v30 = vpop.f32.mrb[9].mxu1  ;;  %v1248_v38 = vpop.f32.mrb[11].mxu0 }
 0x16f   :  { %v1268_v39 = vadd.f32 %v1267_v30, %v1266_v23  ;;  %v1269_v40 = vpop.f32.mrb[10].mxu1 }
 0x170   :  { %v1270_v43 = vpop.f32.mrb[11].mxu1 }
 0x171   :  { %v928_v44 = vadd.f32 %v1268_v39, %v1246_v24 }
 0x18b   :  { %v1288_v46 = vpop.f32.mrb[12].mxu0 }
 0x18c   :  { %v1289_v48 = vpop.f32.mrb[13].mxu0 }
 0x18d   :  { %v1310_v49 = vpop.f32.mrb[12].mxu1  ;;  %v1290_v51 = vadd.f32 %v1289_v48, %v1288_v46  ;;  %v1291_v53 = vpop.f32.mrb[14].mxu0 }
 0x18e   :  { %v1311_v56 = vpop.f32.mrb[13].mxu1  ;;  %v1292_v0 = vpop.f32.mrb[15].mxu0 }
 0x18f   :  { %v968_v1 = vadd.f32 %v1290_v51, %v928_v44  ;;  %v1312_v2 = vadd.f32 %v1311_v56, %v1310_v49  ;;  %v1313_v3 = vpop.f32.mrb[14].mxu1 }
 0x190   :  { %v1314_v5 = vpop.f32.mrb[15].mxu1 }
 0x191   :  { %v1008_v6 = vadd.f32 %v1312_v2, %v968_v1 }
 0x193   :  { %v1013_v7 = vadd.f32 %v1008_v6, %v793_v4 }
 0x195   :  { %1014 = vst [vmem:[#allocation3] sm:$0x3] %v1013_v7 }
 0x19c   :  { %v1019_v8 = vld [vmem:[#allocation3] sm:$0x3] }
 0x19d   :  { %v1029_v9 = vmul.f32 %v1019_v8, %v1019_v8  ;;  %v1020_v10 = vmul.f32 %v1019_v8, %v1018_v60 }
 0x19f   :  { %v1030_v11 = vsel %vm1021_vm0, %v1029_v9, 0.0  ;;  %v1022_v12 = vsel %vm1021_vm0, %v1020_v10, 0.0 }
 0x1a0   :  { %1031 = vadd.xlane.f32.xlu0 %v1030_v11  ;;  %1023 = vadd.xlane.f32.xlu1 %v1022_v12 }
 0x1ed   :  { %v1028_v13 = vpop.xlane.xlu0 %1027 }
 0x22d   :  { %v1032_v14 = vpop.xlane.xlu0 %1031  ;;  %v1024_v18 = vpop.xlane.xlu1 %1023 }
 0x22e   :  { %v1033_v15 = vmul.f32 %v1032_v14, %v1028_v13 }
 0x230   :  { %v1034_v16 = vmax.f32 %v1033_v15, 1e-16 }
 0x232   :  { %1392 = vrsqrt.f32 %v1034_v16 }
 0x23c   :  { %v1393_v17 = vpop.eup %1392 }
 0x23d   :  { %v1036_v19 = vmul.f32 %v1393_v17, %v1024_v18 }
 0x23f   :  { %v1037_v20 = vadd.f32 1.0, %v1036_v19 }
 0x241   :  { %v1038_v21 = vmul.f32 0.5, %v1037_v20 }
 0x243   :  { %v1039_v25 = vmax.f32 %v1038_v21, 0.0 }
 0x245   :  { %v1040_v26 = vmin.f32 %v1039_v25, 1.0 }
 0x247   :  { %1394 = vlog2.f32 %v1040_v26 }
 0x251   :  { %v1395_v27 = vpop.eup %1394 }
 0x252   :  { %v1042_v28 = vmul.f32 0.6931472, %v1395_v27 }
 0x254   :  { %v1043_v31 = vmax.f32 %v1042_v28, -100.0 }
 0x256   :  { %v1045_v32 = vsel %vm1044_vm1, %v1043_v31, 0.0 }
 0x257   :  { %1046 = vadd.xlane.f32.xlu1 %v1045_v32 }
 0x2e4   :  { %v1047_v33 = vpop.xlane.xlu1 %1046 }
 0x2e5   :  { %v1048_v34 = vrot.slane %v1047_v33, 4 }
 0x2e7   :  { %v1049_v35 = vadd.f32 %v1048_v34, %v1047_v33 }
 0x2e9   :  { %v1050_v36 = vrot.slane %v1049_v35, 2 }
 0x2eb   :  { %v1051_v37 = vadd.f32 %v1050_v36, %v1049_v35 }
 0x2ed   :  { %v1052_v41 = vrot.slane %v1051_v37, 1 }
 0x2ef   :  { %v1053_v42 = vadd.f32 %v1052_v41, %v1051_v37 }
 0x2f1   :  { %1316 = vpush %v1053_v42 }
 0x322   :  { %s1317_s2 = spop %1316 }
 0x323   :  { %s1057_s21 = smul.f32 0.5, %s1317_s2 }
 0x325   :  { %s1058_s22 = ssub.f32 0.0, %s1057_s21 }
 0x327   :  { %1060 = sst [smem:[#allocation10]] %s1058_s22 }
 0x328   :  { %1471 = shalt.err (!%p1468_p12)
}
 0x329   :  { %s1485_s30 = smov [#allocation10]  }
 0x32a   :  { %1068 = dma.smem_to_hbm %s1485_s30, 16, %s1835_s3, [#allocation6]  }
 0x32b   :  { %1476 = dma.done.wait [#allocation6], 16  }
 0x32c   :  { %1477 = vsyncadd [#allocation6], 4294967280 }
 0x32d   :  { %1072 = sfence }
 0x32e   :  { %1073 = vsyncpa [#allocation5], 1 }
 0x32f   :  { %1074 = vsyncpa [#allocation8], 1 }
 0x330   :  { %1075 = vsyncpa [#allocation6], 1 }

</bundles_post_ra>
